<compile_context>
chip_gen: v5e
topology: v5e:2x2
jax: 0.10.0
libtpu: 0.0.40
codegen_flags: <defaults>
</compile_context>

<pallas_src>
import jax
import jax.numpy as jnp
from jax.experimental import pallas as pl
from jax.experimental.pallas import tpu as pltpu

_MIB = 1024 * 1024


def _round_up(x: int, m: int) -> int:
    return ((x + m - 1) // m) * m


def _linear_probe_kernel(x_ref, w_ref, b_ref, o_ref):
    # x_ref : [TM, D_pad]    (VMEM, batch tile, streamed)
    # w_ref : [D_pad, N_pad] (VMEM, resident, already transposed in the wrapper)
    # b_ref : [1, N_pad]     (VMEM, resident, f32)
    # o_ref : [TM, N_pad]    (VMEM, batch tile, streamed)
    acc = jnp.dot(x_ref[...], w_ref[...], preferred_element_type=jnp.float32)
    o_ref[...] = (acc + b_ref[...]).astype(o_ref.dtype)


def _vmem_budget_bytes():
    """Generation-aware (budget, limit_cap): v5e/v6e have 128 MiB VMEM, v7x has 64 MiB."""
    try:
        cap = int(getattr(pltpu.get_tpu_info(), "vmem_capacity_bytes", 64 * _MIB))
    except Exception:  # conservative default if the query is unavailable
        cap = 64 * _MIB
    if cap >= 100 * _MIB:            # v5e / v6e
        return 96 * _MIB, 100 * _MIB
    return 44 * _MIB, 52 * _MIB      # v7x


def linear_probe_forward(x, weight, bias, *, compute_dtype=None, return_padded=False):
    """Forward pass of LinearProbe.

    x      : [batch, input_dim]
    weight : [num_outputs, input_dim]  (PyTorch nn.Linear convention)
    bias   : [num_outputs]
    returns: [batch, num_outputs]  (or [batch, N_pad] if return_padded=True)
    """
    batch, input_dim = x.shape
    num_outputs = weight.shape[0]
    out_dtype = x.dtype

    # Optional bf16 streaming path (f32 accumulation is kept inside the kernel).
    if compute_dtype is not None:
        x = x.astype(compute_dtype)
        weight = weight.astype(compute_dtype)

    # Lane/vreg-aligned padding of contraction (D) and output (N) dims.
    d_pad = _round_up(max(input_dim, 1), 128)
    n_pad = _round_up(max(num_outputs, 1), 128)

    # One-time wrapper-side transpose: MXU-native [M,K] x [K,N] orientation.
    w_t = weight.T  # [D, N]
    if d_pad != input_dim or n_pad != num_outputs:
        w_t = jnp.pad(w_t, ((0, d_pad - input_dim), (0, n_pad - num_outputs)))
    if d_pad != input_dim:
        x = jnp.pad(x, ((0, 0), (0, d_pad - input_dim)))
    b_row = bias.astype(jnp.float32)
    if n_pad != num_outputs:
        b_row = jnp.pad(b_row, (0, n_pad - num_outputs))
    b_row = b_row.reshape(1, n_pad)

    x_item = x.dtype.itemsize
    w_item = w_t.dtype.itemsize
    o_item = out_dtype.itemsize

    budget, limit_cap = _vmem_budget_bytes()

    # Resident weight + bias (single-buffered); streamed x/out tiles are double-buffered.
    resident = d_pad * n_pad * w_item + n_pad * 4
    per_row = 2 * (d_pad * x_item + n_pad * o_item)

    # bf16 packs 2 rows per sublane -> 16-row multiples; f32 -> 8.
    row_mult = 16 if x.dtype == jnp.bfloat16 else 8

    tm_max = max((budget - resident) // per_row, row_mult)
    # Cap at 1024 rows (>=512 already sits on the HBM roofline plateau) and guarantee
    # >= 2 grid steps when the batch allows it so both v7x TensorCores get work.
    tm = min(tm_max, 1024, _round_up(batch, row_mult))
    if batch > row_mult:
        tm = min(tm, _round_up(-(-batch // 2), row_mult))
    tm = max((tm // row_mult) * row_mult, row_mult)

    grid = (pl.cdiv(batch, tm),)

    vmem_needed = resident + tm * per_row
    vmem_limit = int(min(max(vmem_needed + 8 * _MIB, 32 * _MIB), limit_cap))

    cost = pl.CostEstimate(
        flops=2 * batch * d_pad * n_pad,
        transcendentals=0,
        bytes_accessed=(
            batch * d_pad * x_item
            + d_pad * n_pad * w_item
            + n_pad * 4
            + batch * n_pad * o_item
        ),
    )

    def _call(single_buffer_resident):
        res_kw = dict(pipeline_mode=pl.Buffered(1)) if single_buffer_resident else {}
        return pl.pallas_call(
            _linear_probe_kernel,
            out_shape=jax.ShapeDtypeStruct((batch, n_pad), out_dtype),
            grid_spec=pltpu.PrefetchScalarGridSpec(
                num_scalar_prefetch=0,
                grid=grid,
                in_specs=[
                    pl.BlockSpec((tm, d_pad), lambda i: (i, 0)),               # x: batch-tiled
                    pl.BlockSpec((d_pad, n_pad), lambda i: (0, 0), **res_kw),  # W: resident
                    pl.BlockSpec((1, n_pad), lambda i: (0, 0), **res_kw),      # b: resident
                ],
                out_specs=pl.BlockSpec((tm, n_pad), lambda i: (i, 0)),         # y: batch-tiled
            ),
            compiler_params=pltpu.CompilerParams(
                dimension_semantics=("parallel",),  # shard batch tiles across v7x TCs
                vmem_limit_bytes=vmem_limit,
            ),
            cost_estimate=cost,
        )(x, w_t, b_row)

    try:
        out = _call(single_buffer_resident=True)
    except Exception:
        # Some Pallas versions don't honor pipeline_mode on pallas_call BlockSpecs;
        # fall back to default double-buffered resident blocks (only costs VMEM headroom).
        out = _call(single_buffer_resident=False)

    if return_padded:
        # Caller consumes the lane-padded [batch, N_pad] output directly (saves a copy pass).
        return out
    return out[:, :num_outputs]


if __name__ == "__main__":
    # Small shapes consistent with the module: x: [batch, input_dim]
    batch = 8
    input_dim = 32
    num_outputs = 4

    key = jax.random.PRNGKey(0)
    kx, kw, kb = jax.random.split(key, 3)

    x = jax.random.normal(kx, (batch, input_dim), dtype=jnp.float32)

    # Deterministic nn.Linear-style init: U(-1/sqrt(in), 1/sqrt(in))
    bound = 1.0 / (input_dim ** 0.5)
    weight = jax.random.uniform(
        kw, (num_outputs, input_dim), minval=-bound, maxval=bound, dtype=jnp.float32
    )
    bias = jax.random.uniform(
        kb, (num_outputs,), minval=-bound, maxval=bound, dtype=jnp.float32
    )

    y = linear_probe_forward(x, weight, bias)
    jax.block_until_ready(y)

    # Reference check against plain JAX (same semantics as torch nn.Linear).
    y_ref = x @ weight.T + bias
    assert y.shape == (batch, num_outputs)
    assert jnp.allclose(y, y_ref, atol=1e-5, rtol=1e-5)

    print("KERNEL_OK")
</pallas_src>

<mosaic_0001>
module attributes {stable_mosaic.version = 11 : i64} {
  func.func @_linear_probe_kernel(%arg0: i32, %arg1: memref<8x128xf32, #tpu.memory_space<vmem>>, %arg2: memref<128x128xf32, #tpu.memory_space<vmem>>, %arg3: memref<1x128xf32, #tpu.memory_space<vmem>>, %arg4: memref<8x128xf32, #tpu.memory_space<vmem>>) attributes {dimension_semantics = [#tpu.dimension_semantics<parallel>], iteration_bounds = array<i64: 1>, scalar_prefetch = 0 : i64, scratch_operands = 0 : i64, tpu.core_type = #tpu.core_type<tc>, window_params = [{transform_indices = @transform_0, window_bounds = array<i64: 8, 128>}, {pipeline_mode = #tpu.pipeline_mode<synchronous>, transform_indices = @transform_1, window_bounds = array<i64: 128, 128>}, {pipeline_mode = #tpu.pipeline_mode<synchronous>, transform_indices = @transform_2, window_bounds = array<i64: 1, 128>}, {transform_indices = @transform_3, window_bounds = array<i64: 8, 128>}]} {
    %c0 = arith.constant 0 : index
    %c0_0 = arith.constant 0 : index
    %0 = vector.load %arg1[%c0, %c0_0] : memref<8x128xf32, #tpu.memory_space<vmem>>, vector<8x128xf32>
    %c0_1 = arith.constant 0 : index
    %c0_2 = arith.constant 0 : index
    %1 = vector.load %arg2[%c0_1, %c0_2] : memref<128x128xf32, #tpu.memory_space<vmem>>, vector<128x128xf32>
    %cst = arith.constant dense<0.000000e+00> : vector<8x128xf32>
    %2 = tpu.matmul %0, %1, %cst {dimension_numbers = #tpu.dot_dimension_numbers<[1], [0], [0], [1], [0, 0, 1, 1], [], []>} : vector<8x128xf32>, vector<128x128xf32>, vector<8x128xf32> -> vector<8x128xf32>
    %c0_3 = arith.constant 0 : index
    %c0_4 = arith.constant 0 : index
    %3 = vector.load %arg3[%c0_3, %c0_4] : memref<1x128xf32, #tpu.memory_space<vmem>>, vector<1x128xf32>
    %4 = vector.broadcast %3 : vector<1x128xf32> to vector<8x128xf32>
    %5 = arith.addf %2, %4 : vector<8x128xf32>
    %c0_5 = arith.constant 0 : index
    %c0_6 = arith.constant 0 : index
    %6 = vector.load %arg4[%c0_5, %c0_6] : memref<8x128xf32, #tpu.memory_space<vmem>>, vector<8x128xf32>
    tpu.vector_store %arg4[%c0_5, %c0_6], %5 {strides = array<i32>} : memref<8x128xf32, #tpu.memory_space<vmem>>, vector<8x128xf32>,
    return
  }
  func.func @transform_0(%arg0: i32) -> (i32, i32) {
    %c0_i32 = arith.constant 0 : i32
    %c0_i32_0 = arith.constant 0 : i32
    return %arg0, %c0_i32 : i32, i32
  }
  func.func @transform_1(%arg0: i32) -> (i32, i32) {
    %c0_i32 = arith.constant 0 : i32
    %c0_i32_0 = arith.constant 0 : i32
    %c0_i32_1 = arith.constant 0 : i32
    return %c0_i32, %c0_i32_0 : i32, i32
  }
  func.func @transform_2(%arg0: i32) -> (i32, i32) {
    %c0_i32 = arith.constant 0 : i32
    %c0_i32_0 = arith.constant 0 : i32
    %c0_i32_1 = arith.constant 0 : i32
    return %c0_i32, %c0_i32_0 : i32, i32
  }
  func.func @transform_3(%arg0: i32) -> (i32, i32) {
    %c0_i32 = arith.constant 0 : i32
    %c0_i32_0 = arith.constant 0 : i32
    return %arg0, %c0_i32 : i32, i32
  }
}

module attributes {stable_mosaic.version = 11 : i64} {
  func.func @_linear_probe_kernel(%arg0: i32, %arg1: memref<8x128xf32, #tpu.memory_space<vmem>>, %arg2: memref<128x128xf32, #tpu.memory_space<vmem>>, %arg3: memref<1x128xf32, #tpu.memory_space<vmem>>, %arg4: memref<8x128xf32, #tpu.memory_space<vmem>>) attributes {dimension_semantics = [#tpu.dimension_semantics<parallel>], iteration_bounds = array<i64: 1>, scalar_prefetch = 0 : i64, scratch_operands = 0 : i64, tpu.core_type = #tpu.core_type<tc>, window_params = [{transform_indices = @transform_0, window_bounds = array<i64: 8, 128>}, {pipeline_mode = #tpu.pipeline_mode<synchronous>, transform_indices = @transform_1, window_bounds = array<i64: 128, 128>}, {pipeline_mode = #tpu.pipeline_mode<synchronous>, transform_indices = @transform_2, window_bounds = array<i64: 1, 128>}, {transform_indices = @transform_3, window_bounds = array<i64: 8, 128>}]} {
    %c0 = arith.constant 0 : index
    %c0_0 = arith.constant 0 : index
    %0 = vector.load %arg1[%c0, %c0_0] : memref<8x128xf32, #tpu.memory_space<vmem>>, vector<8x128xf32>
    %c0_1 = arith.constant 0 : index
    %c0_2 = arith.constant 0 : index
    %1 = vector.load %arg2[%c0_1, %c0_2] : memref<128x128xf32, #tpu.memory_space<vmem>>, vector<128x128xf32>
    %cst = arith.constant dense<0.000000e+00> : vector<8x128xf32>
    %2 = tpu.matmul %0, %1, %cst {dimension_numbers = #tpu.dot_dimension_numbers<[1], [0], [0], [1], [0, 0, 1, 1], [], []>} : vector<8x128xf32>, vector<128x128xf32>, vector<8x128xf32> -> vector<8x128xf32>
    %c0_3 = arith.constant 0 : index
    %c0_4 = arith.constant 0 : index
    %3 = vector.load %arg3[%c0_3, %c0_4] : memref<1x128xf32, #tpu.memory_space<vmem>>, vector<1x128xf32>
    %4 = vector.broadcast %3 : vector<1x128xf32> to vector<8x128xf32>
    %5 = arith.addf %2, %4 : vector<8x128xf32>
    %c0_5 = arith.constant 0 : index
    %c0_6 = arith.constant 0 : index
    %6 = vector.load %arg4[%c0_5, %c0_6] : memref<8x128xf32, #tpu.memory_space<vmem>>, vector<8x128xf32>
    tpu.vector_store %arg4[%c0_5, %c0_6], %5 {strides = array<i32>} : memref<8x128xf32, #tpu.memory_space<vmem>>, vector<8x128xf32>,
    return
  }
  func.func @transform_0(%arg0: i32) -> (i32, i32) {
    %c0_i32 = arith.constant 0 : i32
    %c0_i32_0 = arith.constant 0 : i32
    return %arg0, %c0_i32 : i32, i32
  }
  func.func @transform_1(%arg0: i32) -> (i32, i32) {
    %c0_i32 = arith.constant 0 : i32
    %c0_i32_0 = arith.constant 0 : i32
    %c0_i32_1 = arith.constant 0 : i32
    return %c0_i32, %c0_i32_0 : i32, i32
  }
  func.func @transform_2(%arg0: i32) -> (i32, i32) {
    %c0_i32 = arith.constant 0 : i32
    %c0_i32_0 = arith.constant 0 : i32
    %c0_i32_1 = arith.constant 0 : i32
    return %c0_i32, %c0_i32_0 : i32, i32
  }
  func.func @transform_3(%arg0: i32) -> (i32, i32) {
    %c0_i32 = arith.constant 0 : i32
    %c0_i32_0 = arith.constant 0 : i32
    return %arg0, %c0_i32 : i32, i32
  }
}

</mosaic_0001>

<bundles_post_ra>
// kernel: tpu_custom_call.1
= control target key start
LH: loop header
LB: loop body
LE: loop exit
PB: predicated region body
PF: predicated region fallthrough
CT: control target
= control target key end

     0   :  { %8 = vsyncpa [#allocation3], 0  ;;  %s226_s0 = inlined_call_operand.hbm [shape: f32[8,128], index: 0, kind: input, shape index: {}]   ;;  %s227_s1 = inlined_call_operand.hbm [shape: f32[128,128], index: 1, kind: input, shape index: {}]   ;;  %s228_s2 = inlined_call_operand.vmem [shape: f32[1,128], index: 2, kind: input, shape index: {}]   ;;  %s229_s3 = inlined_call_operand.hbm [shape: f32[8,128], index: 3, kind: output, shape index: {}]  }
   0x1   :  { %9 = vsyncpa [#allocation6], 0 }
   0x2   :  { %10 = vsyncpa [#allocation4], 0  ;;  %s16_s14 = sshll.u32 %s226_s0, 4  ;;  %s189_s15 = smov [#allocation2]   ;;  %s17_s14 = int_to_ptr.hbm [resolvable:$true] %s16_s14 }
   0x3   :  { %s18_s16 = sshll.u32 %s189_s15, 4  ;;  %s26_s19 = sshll.u32 %s227_s1, 4  ;;  %s19_s16 = int_to_ptr.vmem [resolvable:$true] %s18_s16  ;;  %s27_s19 = int_to_ptr.hbm [resolvable:$true] %s26_s19 }
   0x4   :  { %21 = dma.hbm_to_vmem [thread:$0]  %s17_s14, 128, %s19_s16, [#allocation3]  }
   0x5   :  { %s190_s20 = smov [#allocation5]   ;;  %s191_s22 = smov 128  }
   0x6   :  { %s28_s21 = sshll.u32 %s190_s20, 4  ;;  %s192_s23 = smov 8   ;;  %s29_s21 = int_to_ptr.vmem [resolvable:$true] %s28_s21 }
   0x7   :  { %34 = dma.hbm_to_vmem [thread:$0]  %s27_s19, 2048, %s29_s21, [#allocation6], %s191_s22, %s191_s22, %s192_s23  }
   0x8   :  { %183 = dma.done.wait [#allocation3], 128  }
   0x9   :  { %184 = vsyncadd [#allocation3], 4294967168 }
   0xa   :  { %185 = dma.done.wait [#allocation6], 2048  }
   0xb   :  { %186 = vsyncadd [#allocation6], 4294965248  ;;  %v61_v0 = vld [vmem:[#allocation5 + $0x78] sm:$0xff]  ;;  %v60_v1 = vld [vmem:[#allocation5 + $0x70] sm:$0xff]  ;;  %s193_s24 = smov [#allocation7]   ;;  %s94_s28 = sshll.u32 %s229_s3, 4  ;;  %s95_s28 = int_to_ptr.hbm [resolvable:$true] %s94_s28 }
   0xc   :  { %66 = vmatpush.msra.mxu0 %v61_v0  ;;  %v59_v2 = vld [vmem:[#allocation5 + $0x68] sm:$0xff]  ;;  %v58_v3 = vld [vmem:[#allocation5 + $0x60] sm:$0xff]  ;;  %v57_v4 = vld [vmem:[#allocation5 + $0x58] sm:$0xff]  ;;  %s92_s25 = sshll.u32 %s193_s24, 4  ;;  %s93_s25 = int_to_ptr.vmem [resolvable:$true] %s92_s25 }
   0xd   :  { %v56_v5 = vld [vmem:[#allocation5 + $0x50] sm:$0xff]  ;;  %v55_v6 = vld [vmem:[#allocation5 + $0x48] sm:$0xff]  ;;  %v54_v7 = vld [vmem:[#allocation5 + $0x40] sm:$0xff] }
   0xe   :  { %67 = vmatpush.msra.mxu0 %v60_v1  ;;  %v53_v8 = vld [vmem:[#allocation5 + $0x38] sm:$0xff]  ;;  %v52_v9 = vld [vmem:[#allocation5 + $0x30] sm:$0xff]  ;;  %v51_v10 = vld [vmem:[#allocation5 + $0x28] sm:$0xff] }
   0xf   :  { %v50_v11 = vld [vmem:[#allocation5 + $0x20] sm:$0xff]  ;;  %v49_v12 = vld [vmem:[#allocation5 + $0x18] sm:$0xff]  ;;  %v48_v13 = vld [vmem:[#allocation5 + $0x10] sm:$0xff] }
  0x10   :  { %68 = vmatpush.msra.mxu0 %v59_v2  ;;  %v47_v14 = vld [vmem:[#allocation5 + $0x8] sm:$0xff]  ;;  %v46_v15 = vld [vmem:[#allocation5] sm:$0xff]  ;;  %v45_v16 = vld [vmem:[#allocation2] sm:$0xff] }
  0x11   :  { %v110_v17 = vld [vmem:[%s228_s2] ss:$0 sm:$0xff] }
  0x12   :  { %69 = vmatpush.msra.mxu0 %v58_v3 }
  0x14   :  { %70 = vmatpush.msra.mxu0 %v57_v4 }
  0x16   :  { %71 = vmatpush.msra.mxu0 %v56_v5 }
  0x18   :  { %72 = vmatpush.msra.mxu0 %v55_v6 }
  0x1a   :  { %73 = vmatpush.msra.mxu0 %v54_v7 }
  0x1c   :  { %74 = vmatpush.msra.mxu0 %v53_v8 }
  0x1e   :  { %75 = vmatpush.msra.mxu0 %v52_v9 }
  0x20   :  { %76 = vmatpush.msra.mxu0 %v51_v10 }
  0x22   :  { %77 = vmatpush.msra.mxu0 %v50_v11 }
  0x24   :  { %78 = vmatpush.msra.mxu0 %v49_v12 }
  0x26   :  { %79 = vmatpush.msra.mxu0 %v48_v13 }
  0x28   :  { %80 = vmatpush.msra.mxu0 %v47_v14 }
  0x2a   :  { %81 = vmatpush.msra.mxu0 %v46_v15 }
  0x2b   :  { %82 = vmatmul.f32.vlgmr.msra.gmra.mxu0 %v45_v16 }
  0xa8   :  { %v83_v18 = vpop.f32.mrf.mxu0 }
  0xa9   :  { %v84_v19 = vadd.f32 %v110_v17, %v83_v18 }
  0xab   :  { %86 = vst [vmem:[#allocation7] sm:$0xff] %v84_v19 }
  0xac   :  { %97 = dma.vmem_to_hbm [thread:$0]  %s93_s25, 128, %s95_s28, [#allocation4]  }
  0xad   :  { %187 = dma.done.wait [#allocation4], 128  }
  0xae   :  { %188 = vsyncadd [#allocation4], 4294967168 }
  0xaf   :  { %102 = vsyncpa [#allocation3], 1 }
  0xb0   :  { %103 = vsyncpa [#allocation6], 1 }
  0xb1   :  { %104 = vsyncpa [#allocation4], 1 }

// kernel: tpu_custom_call.1
= control target key start
LH: loop header
LB: loop body
LE: loop exit
PB: predicated region body
PF: predicated region fallthrough
CT: control target
= control target key end

     0   :  { %8 = vsyncpa [#allocation3], 0  ;;  %s226_s0 = inlined_call_operand.hbm [shape: f32[8,128], index: 0, kind: input, shape index: {}]   ;;  %s227_s1 = inlined_call_operand.hbm [shape: f32[128,128], index: 1, kind: input, shape index: {}]   ;;  %s228_s2 = inlined_call_operand.vmem [shape: f32[1,128], index: 2, kind: input, shape index: {}]   ;;  %s229_s3 = inlined_call_operand.hbm [shape: f32[8,128], index: 3, kind: output, shape index: {}]  }
   0x1   :  { %9 = vsyncpa [#allocation6], 0 }
   0x2   :  { %10 = vsyncpa [#allocation4], 0  ;;  %s16_s14 = sshll.u32 %s226_s0, 4  ;;  %s189_s15 = smov [#allocation2]   ;;  %s17_s14 = int_to_ptr.hbm [resolvable:$true] %s16_s14 }
   0x3   :  { %s18_s16 = sshll.u32 %s189_s15, 4  ;;  %s26_s19 = sshll.u32 %s227_s1, 4  ;;  %s19_s16 = int_to_ptr.vmem [resolvable:$true] %s18_s16  ;;  %s27_s19 = int_to_ptr.hbm [resolvable:$true] %s26_s19 }
   0x4   :  { %21 = dma.hbm_to_vmem [thread:$0]  %s17_s14, 128, %s19_s16, [#allocation3]  }
   0x5   :  { %s190_s20 = smov [#allocation5]   ;;  %s191_s22 = smov 128  }
   0x6   :  { %s28_s21 = sshll.u32 %s190_s20, 4  ;;  %s192_s23 = smov 8   ;;  %s29_s21 = int_to_ptr.vmem [resolvable:$true] %s28_s21 }
   0x7   :  { %34 = dma.hbm_to_vmem [thread:$0]  %s27_s19, 2048, %s29_s21, [#allocation6], %s191_s22, %s191_s22, %s192_s23  }
   0x8   :  { %183 = dma.done.wait [#allocation3], 128  }
   0x9   :  { %184 = vsyncadd [#allocation3], 4294967168 }
   0xa   :  { %185 = dma.done.wait [#allocation6], 2048  }
   0xb   :  { %186 = vsyncadd [#allocation6], 4294965248  ;;  %v61_v0 = vld [vmem:[#allocation5 + $0x78] sm:$0xff]  ;;  %v60_v1 = vld [vmem:[#allocation5 + $0x70] sm:$0xff]  ;;  %s193_s24 = smov [#allocation7]   ;;  %s94_s28 = sshll.u32 %s229_s3, 4  ;;  %s95_s28 = int_to_ptr.hbm [resolvable:$true] %s94_s28 }
   0xc   :  { %66 = vmatpush.msra.mxu0 %v61_v0  ;;  %v59_v2 = vld [vmem:[#allocation5 + $0x68] sm:$0xff]  ;;  %v58_v3 = vld [vmem:[#allocation5 + $0x60] sm:$0xff]  ;;  %v57_v4 = vld [vmem:[#allocation5 + $0x58] sm:$0xff]  ;;  %s92_s25 = sshll.u32 %s193_s24, 4  ;;  %s93_s25 = int_to_ptr.vmem [resolvable:$true] %s92_s25 }
   0xd   :  { %v56_v5 = vld [vmem:[#allocation5 + $0x50] sm:$0xff]  ;;  %v55_v6 = vld [vmem:[#allocation5 + $0x48] sm:$0xff]  ;;  %v54_v7 = vld [vmem:[#allocation5 + $0x40] sm:$0xff] }
   0xe   :  { %67 = vmatpush.msra.mxu0 %v60_v1  ;;  %v53_v8 = vld [vmem:[#allocation5 + $0x38] sm:$0xff]  ;;  %v52_v9 = vld [vmem:[#allocation5 + $0x30] sm:$0xff]  ;;  %v51_v10 = vld [vmem:[#allocation5 + $0x28] sm:$0xff] }
   0xf   :  { %v50_v11 = vld [vmem:[#allocation5 + $0x20] sm:$0xff]  ;;  %v49_v12 = vld [vmem:[#allocation5 + $0x18] sm:$0xff]  ;;  %v48_v13 = vld [vmem:[#allocation5 + $0x10] sm:$0xff] }
  0x10   :  { %68 = vmatpush.msra.mxu0 %v59_v2  ;;  %v47_v14 = vld [vmem:[#allocation5 + $0x8] sm:$0xff]  ;;  %v46_v15 = vld [vmem:[#allocation5] sm:$0xff]  ;;  %v45_v16 = vld [vmem:[#allocation2] sm:$0xff] }
  0x11   :  { %v110_v17 = vld [vmem:[%s228_s2] ss:$0 sm:$0xff] }
  0x12   :  { %69 = vmatpush.msra.mxu0 %v58_v3 }
  0x14   :  { %70 = vmatpush.msra.mxu0 %v57_v4 }
  0x16   :  { %71 = vmatpush.msra.mxu0 %v56_v5 }
  0x18   :  { %72 = vmatpush.msra.mxu0 %v55_v6 }
  0x1a   :  { %73 = vmatpush.msra.mxu0 %v54_v7 }
  0x1c   :  { %74 = vmatpush.msra.mxu0 %v53_v8 }
  0x1e   :  { %75 = vmatpush.msra.mxu0 %v52_v9 }
  0x20   :  { %76 = vmatpush.msra.mxu0 %v51_v10 }
  0x22   :  { %77 = vmatpush.msra.mxu0 %v50_v11 }
  0x24   :  { %78 = vmatpush.msra.mxu0 %v49_v12 }
  0x26   :  { %79 = vmatpush.msra.mxu0 %v48_v13 }
  0x28   :  { %80 = vmatpush.msra.mxu0 %v47_v14 }
  0x2a   :  { %81 = vmatpush.msra.mxu0 %v46_v15 }
  0x2b   :  { %82 = vmatmul.f32.vlgmr.msra.gmra.mxu0 %v45_v16 }
  0xa8   :  { %v83_v18 = vpop.f32.mrf.mxu0 }
  0xa9   :  { %v84_v19 = vadd.f32 %v110_v17, %v83_v18 }
  0xab   :  { %86 = vst [vmem:[#allocation7] sm:$0xff] %v84_v19 }
  0xac   :  { %97 = dma.vmem_to_hbm [thread:$0]  %s93_s25, 128, %s95_s28, [#allocation4]  }
  0xad   :  { %187 = dma.done.wait [#allocation4], 128  }
  0xae   :  { %188 = vsyncadd [#allocation4], 4294967168 }
  0xaf   :  { %102 = vsyncpa [#allocation3], 1 }
  0xb0   :  { %103 = vsyncpa [#allocation6], 1 }
  0xb1   :  { %104 = vsyncpa [#allocation4], 1 }

</bundles_post_ra>
